<compile_context>
chip_gen: v7x
topology: tpu7x:2x2x1
jax: 0.10.0
libtpu: 0.0.40
codegen_flags: <defaults>
</compile_context>

<pallas_src>
import functools

import numpy as np
import jax
import jax.numpy as jnp
from jax.experimental import pallas as pl
from jax.experimental.pallas import tpu as pltpu


def _dice_kernel(pred_ref, tgt_ref, dice_ref, acc_int, acc_den, *,
                 n_valid_rows, n_valid_cols, smooth, mask_cols):
    i = pl.program_id(0)          # row-block index ("parallel")
    k = pl.program_id(1)          # spatial reduction block index ("arbitrary")

    @pl.when(k == 0)
    def _():
        acc_int[...] = jnp.zeros_like(acc_int)
        acc_den[...] = jnp.zeros_like(acc_den)

    tr, tk = pred_ref.shape
    nc = tk // 128

    # Lane-wide accumulation: fold each (tr, tk) tile into the (tr, 128)
    # accumulators with elementwise VPU adds; no per-tile cross-lane (XLU)
    # reduction in the steady-state loop.
    for c in range(nc):
        lo = c * 128
        p = pred_ref[:, lo:lo + 128].astype(jnp.float32)
        t = tgt_ref[:, lo:lo + 128].astype(jnp.float32)
        pt = p * t
        sq = p * p + t * t
        if mask_cols:
            cols = k * tk + lo + jax.lax.broadcasted_iota(jnp.int32, (tr, 128), 1)
            valid = cols < n_valid_cols
            pt = jnp.where(valid, pt, 0.0)
            sq = jnp.where(valid, sq, 0.0)
        acc_int[...] += pt
        acc_den[...] += sq

    # Epilogue: single cross-lane collapse + dice ratio + row masking.
    @pl.when(k == pl.num_programs(1) - 1)
    def _():
        intersect = jnp.sum(acc_int[...], axis=-1, keepdims=True)   # (tr, 1)
        denom = jnp.sum(acc_den[...], axis=-1, keepdims=True)       # (tr, 1)
        dice = (2.0 * intersect + smooth) / (denom + smooth)
        rows = i * tr + jax.lax.broadcasted_iota(jnp.int32, dice.shape, 0)
        dice_ref[...] = jnp.where(rows < n_valid_rows, dice, 0.0)


def binary_dice_loss(pred, target, smooth=1.0, *, tile_r=128, tile_k=2048):
    """Pallas equivalent of BinearyDICELoss.forward(pred, target, smooth)."""
    assert pred.shape == target.shape
    assert pred.ndim >= 2
    lead_shape = pred.shape[:-2]
    H, W = pred.shape[-2], pred.shape[-1]
    R = int(np.prod(lead_shape)) if lead_shape else 1
    K = H * W

    # Keep native dtype (bf16 stays bf16 in HBM); cast to f32 happens in-kernel.
    pred2 = jnp.reshape(pred, (R, K))
    tgt2 = jnp.reshape(target, (R, K))

    # Pad only when the slab is not already (8, 128)-aligned.  Zero padding is
    # reduction-neutral and padded rows are masked out of the mean in-kernel.
    Rp = -(-R // 8) * 8
    Kp = -(-K // 128) * 128
    if (Rp, Kp) != (R, K):
        pred2 = jnp.pad(pred2, ((0, Rp - R), (0, Kp - K)))
        tgt2 = jnp.pad(tgt2, ((0, Rp - R), (0, Kp - K)))

    TR = min(int(tile_r), Rp)   # if Rp < tile_r, TR == full dim (multiple of 8)
    TK = min(int(tile_k), Kp)   # if Kp < tile_k, TK == full dim (multiple of 128)

    nR = pl.cdiv(Rp, TR)
    nK = pl.cdiv(Kp, TK)
    # Garbage columns can only appear in a partial last K tile.
    mask_cols = (Kp % TK) != 0

    kernel = functools.partial(
        _dice_kernel,
        n_valid_rows=R,
        n_valid_cols=Kp,
        smooth=float(smooth),
        mask_cols=mask_cols,
    )

    bytes_accessed = Rp * Kp * (pred2.dtype.itemsize + tgt2.dtype.itemsize) + nR * TR * 4
    cost = pl.CostEstimate(flops=6 * Rp * Kp, transcendentals=0,
                           bytes_accessed=int(bytes_accessed))

    per_row_dice = pl.pallas_call(
        kernel,
        out_shape=jax.ShapeDtypeStruct((nR * TR, 1), jnp.float32),
        grid_spec=pltpu.PrefetchScalarGridSpec(
            num_scalar_prefetch=0,
            grid=(nR, nK),
            in_specs=[
                pl.BlockSpec((TR, TK), lambda i, k: (i, k)),
                pl.BlockSpec((TR, TK), lambda i, k: (i, k)),
            ],
            out_specs=pl.BlockSpec((TR, 1), lambda i, k: (i, 0)),
            scratch_shapes=[
                pltpu.VMEM((TR, 128), jnp.float32),   # intersect accumulator
                pltpu.VMEM((TR, 128), jnp.float32),   # denominator accumulator
            ],
        ),
        compiler_params=pltpu.CompilerParams(
            dimension_semantics=("parallel", "arbitrary")),
        cost_estimate=cost,
    )(pred2, tgt2)

    # Tiny epilogue: invalid / padded rows were written as 0 by the kernel.
    # The cross-row-block mean stays outside the kernel because the row axis
    # may be sharded across v7x's two TensorCores.
    return 1.0 - jnp.sum(per_row_dice) / jnp.float32(R)


def _reference(pred, target, smooth=1.0):
    pred = pred.astype(jnp.float32)
    target = target.astype(jnp.float32)
    intersect = jnp.sum(pred * target, axis=(-2, -1))
    denominator = jnp.sum(pred ** 2, axis=(-2, -1)) + jnp.sum(target ** 2, axis=(-2, -1))
    dice = (2.0 * intersect + smooth) / (denominator + smooth)
    return 1.0 - jnp.mean(dice)


if __name__ == "__main__":
    key = jax.random.PRNGKey(0)
    k1, k2, k3, k4 = jax.random.split(key, 4)

    # Primary test: NCHW f32, (8, 128)-aligned -> no padding path, single tile.
    B, C, H, W = 2, 4, 16, 16
    pred = jax.nn.sigmoid(jax.random.normal(k1, (B, C, H, W), dtype=jnp.float32))
    target = (jax.random.uniform(k2, (B, C, H, W)) > 0.5).astype(jnp.float32)

    out = jax.block_until_ready(binary_dice_loss(pred, target, smooth=1.0))
    ref = _reference(pred, target, smooth=1.0)
    np.testing.assert_allclose(np.asarray(out), np.asarray(ref), rtol=1e-5, atol=1e-5)

    # Secondary test: bf16 inputs streamed natively, multiple K tiles with a
    # partial last tile (exercises the accumulator loop and the column mask).
    B2, C2, H2, W2 = 2, 4, 48, 48
    pred2 = jax.nn.sigmoid(
        jax.random.normal(k3, (B2, C2, H2, W2), dtype=jnp.float32)).astype(jnp.bfloat16)
    target2 = (jax.random.uniform(k4, (B2, C2, H2, W2)) > 0.5).astype(jnp.bfloat16)

    out2 = jax.block_until_ready(binary_dice_loss(pred2, target2, smooth=1.0, tile_k=1024))
    ref2 = _reference(pred2, target2, smooth=1.0)
    np.testing.assert_allclose(np.asarray(out2), np.asarray(ref2), rtol=1e-4, atol=1e-5)

    print("KERNEL_OK")
</pallas_src>

<mosaic_0001>
module attributes {stable_mosaic.version = 11 : i64} {
  func.func @_dice_kernel(%arg0: i32, %arg1: i32, %arg2: memref<8x256xf32, #tpu.memory_space<vmem>>, %arg3: memref<8x256xf32, #tpu.memory_space<vmem>>, %arg4: memref<8x1xf32, #tpu.memory_space<vmem>>, %arg5: memref<8x128xf32, #tpu.memory_space<vmem>>, %arg6: memref<8x128xf32, #tpu.memory_space<vmem>>) attributes {dimension_semantics = [#tpu.dimension_semantics<parallel>, #tpu.dimension_semantics<arbitrary>], iteration_bounds = array<i64: 1, 1>, scalar_prefetch = 0 : i64, scratch_operands = 2 : i64, tpu.core_type = #tpu.core_type<tc>, window_params = [{transform_indices = @transform_0, window_bounds = array<i64: 8, 256>}, {transform_indices = @transform_1, window_bounds = array<i64: 8, 256>}, {transform_indices = @transform_2, window_bounds = array<i64: 8, 1>}]} {
    %c0_i32 = arith.constant 0 : i32
    %0 = arith.cmpi eq, %arg1, %c0_i32 : i32
    %1 = arith.extui %0 : i1 to i32
    %c0_i32_0 = arith.constant 0 : i32
    %2 = arith.cmpi ne, %1, %c0_i32_0 : i32
    scf.if %2 {
      %cst = arith.constant 0.000000e+00 : f32
      %30 = vector.broadcast %cst : f32 to vector<8x128xf32>
      %c0_25 = arith.constant 0 : index
      %c0_26 = arith.constant 0 : index
      %31 = vector.load %arg5[%c0_25, %c0_26] : memref<8x128xf32, #tpu.memory_space<vmem>>, vector<8x128xf32>
      tpu.vector_store %arg5[%c0_25, %c0_26], %30 {strides = array<i32>} : memref<8x128xf32, #tpu.memory_space<vmem>>, vector<8x128xf32>,
      %cst_27 = arith.constant 0.000000e+00 : f32
      %32 = vector.broadcast %cst_27 : f32 to vector<8x128xf32>
      %c0_28 = arith.constant 0 : index
      %c0_29 = arith.constant 0 : index
      %33 = vector.load %arg6[%c0_28, %c0_29] : memref<8x128xf32, #tpu.memory_space<vmem>>, vector<8x128xf32>
      tpu.vector_store %arg6[%c0_28, %c0_29], %32 {strides = array<i32>} : memref<8x128xf32, #tpu.memory_space<vmem>>, vector<8x128xf32>,
    } else {
    }
    %c0 = arith.constant 0 : index
    %c0_1 = arith.constant 0 : index
    %3 = vector.load %arg2[%c0, %c0_1] : memref<8x256xf32, #tpu.memory_space<vmem>>, vector<8x128xf32>
    %c0_2 = arith.constant 0 : index
    %c0_3 = arith.constant 0 : index
    %4 = vector.load %arg3[%c0_2, %c0_3] : memref<8x256xf32, #tpu.memory_space<vmem>>, vector<8x128xf32>
    %5 = arith.mulf %3, %4 : vector<8x128xf32>
    %6 = arith.mulf %3, %3 : vector<8x128xf32>
    %7 = arith.mulf %4, %4 : vector<8x128xf32>
    %8 = arith.addf %6, %7 : vector<8x128xf32>
    %c0_4 = arith.constant 0 : index
    %c0_5 = arith.constant 0 : index
    %9 = vector.load %arg5[%c0_4, %c0_5] : memref<8x128xf32, #tpu.memory_space<vmem>>, vector<8x128xf32>
    %10 = arith.addf %9, %5 : vector<8x128xf32>
    %c0_6 = arith.constant 0 : index
    %c0_7 = arith.constant 0 : index
    %11 = vector.load %arg5[%c0_6, %c0_7] : memref<8x128xf32, #tpu.memory_space<vmem>>, vector<8x128xf32>
    tpu.vector_store %arg5[%c0_6, %c0_7], %10 {strides = array<i32>} : memref<8x128xf32, #tpu.memory_space<vmem>>, vector<8x128xf32>,
    %c0_8 = arith.constant 0 : index
    %c0_9 = arith.constant 0 : index
    %12 = vector.load %arg6[%c0_8, %c0_9] : memref<8x128xf32, #tpu.memory_space<vmem>>, vector<8x128xf32>
    %13 = arith.addf %12, %8 : vector<8x128xf32>
    %c0_10 = arith.constant 0 : index
    %c0_11 = arith.constant 0 : index
    %14 = vector.load %arg6[%c0_10, %c0_11] : memref<8x128xf32, #tpu.memory_space<vmem>>, vector<8x128xf32>
    tpu.vector_store %arg6[%c0_10, %c0_11], %13 {strides = array<i32>} : memref<8x128xf32, #tpu.memory_space<vmem>>, vector<8x128xf32>,
    %c0_12 = arith.constant 0 : index
    %c128 = arith.constant 128 : index
    %15 = vector.load %arg2[%c0_12, %c128] : memref<8x256xf32, #tpu.memory_space<vmem>>, vector<8x128xf32>
    %c0_13 = arith.constant 0 : index
    %c128_14 = arith.constant 128 : index
    %16 = vector.load %arg3[%c0_13, %c128_14] : memref<8x256xf32, #tpu.memory_space<vmem>>, vector<8x128xf32>
    %17 = arith.mulf %15, %16 : vector<8x128xf32>
    %18 = arith.mulf %15, %15 : vector<8x128xf32>
    %19 = arith.mulf %16, %16 : vector<8x128xf32>
    %20 = arith.addf %18, %19 : vector<8x128xf32>
    %c0_15 = arith.constant 0 : index
    %c0_16 = arith.constant 0 : index
    %21 = vector.load %arg5[%c0_15, %c0_16] : memref<8x128xf32, #tpu.memory_space<vmem>>, vector<8x128xf32>
    %22 = arith.addf %21, %17 : vector<8x128xf32>
    %c0_17 = arith.constant 0 : index
    %c0_18 = arith.constant 0 : index
    %23 = vector.load %arg5[%c0_17, %c0_18] : memref<8x128xf32, #tpu.memory_space<vmem>>, vector<8x128xf32>
    tpu.vector_store %arg5[%c0_17, %c0_18], %22 {strides = array<i32>} : memref<8x128xf32, #tpu.memory_space<vmem>>, vector<8x128xf32>,
    %c0_19 = arith.constant 0 : index
    %c0_20 = arith.constant 0 : index
    %24 = vector.load %arg6[%c0_19, %c0_20] : memref<8x128xf32, #tpu.memory_space<vmem>>, vector<8x128xf32>
    %25 = arith.addf %24, %20 : vector<8x128xf32>
    %c0_21 = arith.constant 0 : index
    %c0_22 = arith.constant 0 : index
    %26 = vector.load %arg6[%c0_21, %c0_22] : memref<8x128xf32, #tpu.memory_space<vmem>>, vector<8x128xf32>
    tpu.vector_store %arg6[%c0_21, %c0_22], %25 {strides = array<i32>} : memref<8x128xf32, #tpu.memory_space<vmem>>, vector<8x128xf32>,
    %c0_i32_23 = arith.constant 0 : i32
    %27 = arith.cmpi eq, %arg1, %c0_i32_23 : i32
    %28 = arith.extui %27 : i1 to i32
    %c0_i32_24 = arith.constant 0 : i32
    %29 = arith.cmpi ne, %28, %c0_i32_24 : i32
    scf.if %29 {
      %c0_25 = arith.constant 0 : index
      %c0_26 = arith.constant 0 : index
      %30 = vector.load %arg5[%c0_25, %c0_26] : memref<8x128xf32, #tpu.memory_space<vmem>>, vector<8x128xf32>
      %cst = arith.constant dense<0.000000e+00> : vector<8xf32>
      %31 = vector.multi_reduction <add>, %30, %cst [1] : vector<8x128xf32> to vector<8xf32>
      %32 = vector.shape_cast %31 : vector<8xf32> to vector<8x1xf32>
      %c0_27 = arith.constant 0 : index
      %c0_28 = arith.constant 0 : index
      %33 = vector.load %arg6[%c0_27, %c0_28] : memref<8x128xf32, #tpu.memory_space<vmem>>, vector<8x128xf32>
      %cst_29 = arith.constant dense<0.000000e+00> : vector<8xf32>
      %34 = vector.multi_reduction <add>, %33, %cst_29 [1] : vector<8x128xf32> to vector<8xf32>
      %35 = vector.shape_cast %34 : vector<8xf32> to vector<8x1xf32>
      %cst_30 = arith.constant 2.000000e+00 : f32
      %36 = vector.broadcast %cst_30 : f32 to vector<8x1xf32>
      %37 = arith.mulf %36, %32 : vector<8x1xf32>
      %cst_31 = arith.constant 1.000000e+00 : f32
      %38 = vector.broadcast %cst_31 : f32 to vector<8x1xf32>
      %39 = arith.addf %37, %38 : vector<8x1xf32>
      %cst_32 = arith.constant 1.000000e+00 : f32
      %40 = vector.broadcast %cst_32 : f32 to vector<8x1xf32>
      %41 = arith.addf %35, %40 : vector<8x1xf32>
      %42 = arith.divf %39, %41 : vector<8x1xf32>
      %c8_i32 = arith.constant 8 : i32
      %43 = arith.muli %arg0, %c8_i32 : i32
      %44 = tpu.iota {dimensions = array<i32: 0>} : vector<8x1xi32>
      %45 = vector.broadcast %43 : i32 to vector<8x1xi32>
      %46 = arith.addi %45, %44 : vector<8x1xi32>
      %c8_i32_33 = arith.constant 8 : i32
      %47 = vector.broadcast %c8_i32_33 : i32 to vector<8x1xi32>
      %48 = arith.cmpi slt, %46, %47 : vector<8x1xi32>
      %cst_34 = arith.constant 0.000000e+00 : f32
      %49 = vector.broadcast %cst_34 : f32 to vector<8x1xf32>
      %50 = arith.select %48, %42, %49 : vector<8x1xi1>, vector<8x1xf32>
      %c0_35 = arith.constant 0 : index
      %c0_36 = arith.constant 0 : index
      %51 = vector.load %arg4[%c0_35, %c0_36] : memref<8x1xf32, #tpu.memory_space<vmem>>, vector<8x1xf32>
      tpu.vector_store %arg4[%c0_35, %c0_36], %50 {strides = array<i32>} : memref<8x1xf32, #tpu.memory_space<vmem>>, vector<8x1xf32>,
    } else {
    }
    return
  }
  func.func @transform_0(%arg0: i32, %arg1: i32) -> (i32, i32) {
    %c0_i32 = arith.constant 0 : i32
    return %arg0, %arg1 : i32, i32
  }
  func.func @transform_1(%arg0: i32, %arg1: i32) -> (i32, i32) {
    %c0_i32 = arith.constant 0 : i32
    return %arg0, %arg1 : i32, i32
  }
  func.func @transform_2(%arg0: i32, %arg1: i32) -> (i32, i32) {
    %c0_i32 = arith.constant 0 : i32
    %c0_i32_0 = arith.constant 0 : i32
    return %arg0, %c0_i32 : i32, i32
  }
}

</mosaic_0001>

<bundles_post_ra>
// kernel: tpu_custom_call.1
= control target key start
LH: loop header
LB: loop body
LE: loop exit
PB: predicated region body
PF: predicated region fallthrough
CT: control target
= control target key end

     0   :  { %7 = vsyncpa [#allocation5], 0  ;;  %s190_s0 = inlined_call_operand.hbm [shape: f32[8,256], index: 0, kind: input, shape index: {}]   ;;  %s191_s1 = inlined_call_operand.hbm [shape: f32[8,256], index: 1, kind: input, shape index: {}]   ;;  %s192_s2 = inlined_call_operand.vmem [shape: f32[8,1], index: 2, kind: output, shape index: {}]  }
   0x1   :  { %8 = vsyncpa [#allocation7], 0  ;;  %s146_s9 = smov [#allocation4]   ;;  %s147_s11 = smov [#allocation6]  }
   0x2   :  { %s15_s10 = sshll.u32 %s146_s9, 4  ;;  %s25_s12 = sshll.u32 %s147_s11, 4  ;;  %s16_s10 = int_to_ptr.vmem [resolvable:$true] %s15_s10  ;;  %s26_s12 = int_to_ptr.vmem [resolvable:$true] %s25_s12 }
   0x3   :  { %s98_s15 = scalar_lea.hbm %s190_s0, 256 }
   0x4   :  { %p99_p0 = scmp.ne.s32.totalorder %s190_s0, %s98_s15  ;;  %p102_p1 = scmp.lt.u32.totalorder %s98_s15, %s190_s0 }
   0x6   :  { %p104_p2 = pnand %p102_p1, %p99_p0 }
   0x8   :  { %107 = shalt.err (!%p104_p2)
}
   0x9   :  { %s108_s20 = scalar_lea.vmem %s16_s10, 256  ;;  %p113_p4 = scmp.lt.s32.totalorder %s16_s10, %s16_s10 }
   0xa   :  { %p109_p3 = scmp.ne.s32.totalorder %s16_s10, %s108_s20  ;;  %p114_p5 = scmp.lt.s32.totalorder %s108_s20, %s108_s20 }
   0xc   :  { %p115_p6 = por %p114_p5, %p113_p4 }
   0xe   :  { %p116_p7 = pnand %p115_p6, %p109_p3 }
  0x10   :  { %119 = shalt.err (!%p116_p7)
}
  0x11   :  { %18 = dma.hbm_to_vmem [thread:$0]  %s190_s0, 256, %s16_s10, [#allocation5]  }
  0x12   :  { %s120_s25 = scalar_lea.hbm %s191_s1, 256 }
  0x13   :  { %p121_p8 = scmp.ne.s32.totalorder %s191_s1, %s120_s25  ;;  %p124_p9 = scmp.lt.u32.totalorder %s120_s25, %s191_s1 }
  0x15   :  { %p126_p10 = pnand %p124_p9, %p121_p8 }
  0x17   :  { %129 = shalt.err (!%p126_p10)
}
  0x18   :  { %s130_s30 = scalar_lea.vmem %s26_s12, 256  ;;  %p135_p12 = scmp.lt.s32.totalorder %s26_s12, %s26_s12 }
  0x19   :  { %p131_p11 = scmp.ne.s32.totalorder %s26_s12, %s130_s30  ;;  %p136_p13 = scmp.lt.s32.totalorder %s130_s30, %s130_s30 }
  0x1b   :  { %p137_p0 = por %p136_p13, %p135_p12 }
  0x1d   :  { %p138_p1 = pnand %p137_p0, %p131_p11 }
  0x1f   :  { %141 = shalt.err (!%p138_p1)
}
  0x20   :  { %28 = dma.hbm_to_vmem [thread:$0]  %s191_s1, 256, %s26_s12, [#allocation7]  }
  0x21   :  { %142 = dma.done.wait [#allocation5], 256  }
  0x22   :  { %143 = vsyncadd [#allocation5], 4294967040 }
  0x23   :  { %144 = dma.done.wait [#allocation7], 256  }
  0x24   :  { %145 = vsyncadd [#allocation7], 4294967040  ;;  %v41_v0 = vld [vmem:[#allocation4] sm:$0xff]  ;;  %v42_v1 = vld [vmem:[#allocation6] sm:$0xff]  ;;  %vm86_vm0 = vcmask 7168  }
  0x25   :  { %v53_v2 = vld [vmem:[#allocation4 + $0x8] sm:$0xff]  ;;  %v44_v3 = vmul.f32 %v41_v0, %v41_v0  ;;  %v45_v4 = vmul.f32 %v42_v1, %v42_v1  ;;  %v54_v5 = vld [vmem:[#allocation6 + $0x8] sm:$0xff]  ;;  %v43_v10 = vmul.f32 %v42_v1, %v41_v0 }
  0x26   :  { %v56_v6 = vmul.f32 %v53_v2, %v53_v2  ;;  %v57_v7 = vmul.f32 %v54_v5, %v54_v5  ;;  %v55_v11 = vmul.f32 %v54_v5, %v53_v2 }
  0x27   :  { %v46_v8 = vadd.f32 %v45_v4, %v44_v3 }
  0x28   :  { %v58_v9 = vadd.f32 %v57_v7, %v56_v6  ;;  %v60_v13 = vadd.f32 %v55_v11, %v43_v10 }
  0x2a   :  { %v63_v12 = vadd.f32 %v58_v9, %v46_v8 }
  0x2c   :  { %72 = vadd.xlane.f32.xlu0 %v63_v12 }
  0x30   :  { %69 = vadd.xlane.f32.xlu0 %v60_v13 }
  0xb9   :  { %v73_v14 = vpop.xlane.xlu0 %72 }
  0xba   :  { %v76_v15 = vadd.f32 1.0, %v73_v14 }
  0xbc   :  { %96 = vrcp.f32 %v76_v15 }
  0xbd   :  { %v70_v16 = vpop.xlane.xlu0 %69 }
  0xbe   :  { %v74_v17 = vmul.f32 2.0, %v70_v16 }
  0xc0   :  { %v75_v18 = vadd.f32 1.0, %v74_v17 }
  0xc6   :  { %v97_v19 = vpop.eup %96 }
  0xc7   :  { %v78_v20 = vmul.f32 %v97_v19, %v75_v18 }
  0xc9   :  { %87 = vst.msk [vmem:[%s192_s2] sm:$0xff] %vm86_vm0, %v78_v20 }
  0xca   :  { %92 = vsyncpa [#allocation5], 1 }
  0xcb   :  { %93 = vsyncpa [#allocation7], 1 }

</bundles_post_ra>
